<compile_context>
chip_gen: v6e
topology: v6e:2x2x1
jax: 0.10.0
libtpu: 0.0.40
codegen_flags: <defaults>
</compile_context>

<pallas_src>
import jax
import jax.numpy as jnp
from jax.experimental import pallas as pl
from jax.experimental.pallas import tpu as pltpu

ALPHA = 0.5
EPS = 1e-6
CLAMP_MAX = 1.0e6


def _power_norm_kernel(x_ref, o_ref):
    # x_ref / o_ref: (1, C, HW_TILE) block in VMEM.
    x = x_ref[...].astype(jnp.float32)
    # relu + eps  (already >= EPS afterwards, so the lower clamp is redundant)
    x = jnp.maximum(x, 0.0) + EPS
    # upper clamp only
    x = jnp.minimum(x, CLAMP_MAX)
    # power transform; alpha == 0.5 -> single-EUP sqrt
    if ALPHA == 0.5:
        x = jnp.sqrt(x)
    else:
        x = jnp.power(x, ALPHA)  # general-alpha fallback (exp/log path)
    # normalize over the channel axis (axis=1 of the (1, C, HW_TILE) block)
    denom = jnp.sum(x, axis=1, keepdims=True) + EPS          # (1, 1, HW_TILE)
    inv = pl.reciprocal(denom, approx=False)                  # exact, 1e-5 safe
    o_ref[...] = (x * inv).astype(o_ref.dtype)


def _choose_hw_tile(C, HW, itemsize):
    """Pick a lane tile: multiple of 128, VMEM-safe on v5e/v6e/v7x, divides HW."""
    # Keep 2x(in + out) double-buffered tiles under ~8 MiB -> safe even with
    # the 16 MiB default scoped VMEM on v5e and 32 MiB default on v7x.
    budget_bytes = 8 * 1024 * 1024
    max_tile = budget_bytes // max(1, 4 * C * itemsize)
    cap = min(2048, max_tile)              # mem-bound sweet spot ~512-2048 lanes
    cap = max(128, (cap // 128) * 128)
    if HW <= cap:
        return HW                          # full extent (always a legal block)
    # Largest multiple of 128 that divides HW and fits the cap.
    t = cap
    while t >= 128:
        if HW % t == 0:
            return t
        t -= 128
    # No 128-multiple divisor of HW: fall back to the full extent.
    return HW


def power_normalization(x):
    """x: (N, C, H, W) float array. Returns same shape/dtype."""
    N, C, H, W = x.shape
    HW = H * W
    x2 = x.reshape(N, C, HW)

    hw_tile = _choose_hw_tile(C, HW, jnp.dtype(x.dtype).itemsize)
    num_hw_tiles = HW // hw_tile

    out = pl.pallas_call(
        _power_norm_kernel,
        out_shape=jax.ShapeDtypeStruct((N, C, HW), x.dtype),
        grid_spec=pltpu.PrefetchScalarGridSpec(
            num_scalar_prefetch=0,
            grid=(N, num_hw_tiles),
            in_specs=[pl.BlockSpec((1, C, hw_tile), lambda n, s: (n, 0, s))],
            out_specs=pl.BlockSpec((1, C, hw_tile), lambda n, s: (n, 0, s)),
        ),
        compiler_params=pltpu.CompilerParams(
            dimension_semantics=("parallel", "parallel"),
        ),
    )(x2)

    return out.reshape(N, C, H, W)


def _reference(x):
    # Pure-JAX reference mirroring the PyTorch forward exactly.
    x = jnp.maximum(x, 0.0) + EPS
    x = jnp.clip(x, EPS, CLAMP_MAX)
    x = jnp.power(x, ALPHA)
    return x / (jnp.sum(x, axis=1, keepdims=True) + EPS)


if __name__ == "__main__":
    key = jax.random.PRNGKey(0)
    x = jax.random.normal(key, (2, 4, 16, 16), dtype=jnp.float32)

    y = power_normalization(x)
    y = jax.block_until_ready(y)

    y_ref = _reference(x)
    assert y.shape == x.shape and y.dtype == x.dtype
    assert jnp.allclose(y, y_ref, atol=1e-5, rtol=1e-5), "mismatch vs reference"

    print("KERNEL_OK")
</pallas_src>

<mosaic_0001>
module attributes {stable_mosaic.version = 11 : i64} {
  func.func @_power_norm_kernel(%arg0: i32, %arg1: i32, %arg2: memref<1x4x256xf32, #tpu.memory_space<vmem>>, %arg3: memref<1x4x256xf32, #tpu.memory_space<vmem>>) attributes {dimension_semantics = [#tpu.dimension_semantics<parallel>, #tpu.dimension_semantics<parallel>], iteration_bounds = array<i64: 2, 1>, scalar_prefetch = 0 : i64, scratch_operands = 0 : i64, tpu.core_type = #tpu.core_type<tc>, window_params = [{transform_indices = @transform_0, window_bounds = array<i64: 1, 4, 256>}, {transform_indices = @transform_1, window_bounds = array<i64: 1, 4, 256>}]} {
    %c0 = arith.constant 0 : index
    %c0_0 = arith.constant 0 : index
    %c0_1 = arith.constant 0 : index
    %0 = vector.load %arg2[%c0, %c0_0, %c0_1] : memref<1x4x256xf32, #tpu.memory_space<vmem>>, vector<1x4x256xf32>
    %cst = arith.constant 0.000000e+00 : f32
    %1 = vector.broadcast %cst : f32 to vector<1x4x256xf32>
    %2 = arith.maximumf %0, %1 : vector<1x4x256xf32>
    %cst_2 = arith.constant 9.99999997E-7 : f32
    %3 = vector.broadcast %cst_2 : f32 to vector<1x4x256xf32>
    %4 = arith.addf %2, %3 : vector<1x4x256xf32>
    %cst_3 = arith.constant 1.000000e+06 : f32
    %5 = vector.broadcast %cst_3 : f32 to vector<1x4x256xf32>
    %6 = arith.minimumf %4, %5 : vector<1x4x256xf32>
    %7 = math.sqrt %6 : vector<1x4x256xf32>
    %cst_4 = arith.constant dense<0.000000e+00> : vector<1x256xf32>
    %8 = vector.multi_reduction <add>, %7, %cst_4 [1] : vector<1x4x256xf32> to vector<1x256xf32>
    %9 = vector.shape_cast %8 : vector<1x256xf32> to vector<1x1x256xf32>
    %cst_5 = arith.constant 9.99999997E-7 : f32
    %10 = vector.broadcast %cst_5 : f32 to vector<1x1x256xf32>
    %11 = arith.addf %9, %10 : vector<1x1x256xf32>
    %12 = tpu.reciprocal %11 : vector<1x1x256xf32> -> vector<1x1x256xf32>
    %13 = vector.broadcast %12 : vector<1x1x256xf32> to vector<1x4x256xf32>
    %14 = arith.mulf %7, %13 : vector<1x4x256xf32>
    %c0_6 = arith.constant 0 : index
    %c0_7 = arith.constant 0 : index
    %c0_8 = arith.constant 0 : index
    %15 = vector.load %arg3[%c0_6, %c0_7, %c0_8] : memref<1x4x256xf32, #tpu.memory_space<vmem>>, vector<1x4x256xf32>
    tpu.vector_store %arg3[%c0_6, %c0_7, %c0_8], %14 {strides = array<i32>} : memref<1x4x256xf32, #tpu.memory_space<vmem>>, vector<1x4x256xf32>,
    return
  }
  func.func @transform_0(%arg0: i32, %arg1: i32) -> (i32, i32, i32) {
    %c0_i32 = arith.constant 0 : i32
    %c0_i32_0 = arith.constant 0 : i32
    return %arg0, %c0_i32, %arg1 : i32, i32, i32
  }
  func.func @transform_1(%arg0: i32, %arg1: i32) -> (i32, i32, i32) {
    %c0_i32 = arith.constant 0 : i32
    %c0_i32_0 = arith.constant 0 : i32
    return %arg0, %c0_i32, %arg1 : i32, i32, i32
  }
}

</mosaic_0001>

<bundles_post_ra>
// kernel: tpu_custom_call.1
= control target key start
LH: loop header
LB: loop body
LE: loop exit
PB: predicated region body
PF: predicated region fallthrough
CT: control target
= control target key end

     0   :  { %6 = vsyncpa [#allocation3], 0  ;;  %s638_s0 = inlined_call_operand.hbm [shape: f32[2,4,256], index: 0, kind: input, shape index: {}]   ;;  %s639_s1 = inlined_call_operand.hbm [shape: f32[2,4,256], index: 1, kind: output, shape index: {}]  }
   0x1   :  { %8 = vsyncpa [#allocation3 + $0x1], 0 }
   0x2   :  { %9 = vsyncpa [#allocation4], 0 }
   0x3   :  { %11 = vsyncpa [#allocation4 + $0x1], 0  ;;  %s500_s6 = smov 0   ;;  %s502_s7 = smov 0  }
   0x4   :  { %s504_s8 = smov 0   ;;  %s506_s9 = smov 0  }
   0x5   :  { %s508_s10 = smov 0   ;;  %s510_s11 = smov 0  }
   0x6 LB: > { %s293_s12 = sadd.s32 4294967295, %s486_s11   ;;  %s294_s13 = sadd.s32 4294967294, %s486_s11   ;;  %s486_s11 = sphi %s510_s11, %s17_s11   ;;  %s482_s10 = sphi %s508_s10, %s651_s10   ;;  %s478_s9 = sphi %s506_s9, %s650_s9   ;;  %s474_s8 = sphi %s504_s8, %s649_s8   ;;  %s470_s7 = sphi %s502_s7, %s648_s7   ;;  %s466_s6 = sphi %s500_s6, %s647_s6  }
   0x7   : > { %s29_s14 = sadd.s32 1, %s482_s10  ;;  %s38_s15 = sadd.s32 1, %s474_s8 }
   0x8   : > { %p31_p0 = scmp.ge.s32.totalorder %s29_s14, 2  ;;  %p45_p1 = scmp.ne.s32.totalorder %s474_s8, %s470_s7 }
   0x9   : > { %p46_p2 = scmp.eq.s32.totalorder %s486_s11, 0  ;;  %p51_p3 = scmp.ne.s32.totalorder %s470_s7, %s466_s6 }
   0xa   : > { %s653_s14 = smov (%p31_p0, %s29_s14), 0  ;;  %p52_p5 = scmp.eq.s32.totalorder %s293_s12, 0 }
   0xb   : > { %p541_p4 = por %p46_p2, %p45_p1  ;;  %s33_s17 = ssub.s32 %s482_s10, %s653_s14 }
   0xc   : > { %p77_p6 = scmp.eq.s32.totalorder %s293_s12, 1  ;;  %p36_p7 = scmp.eq.s32.totalorder %s33_s17, 0 }
   0xd   : > { %p547_p8 = por %p52_p5, %p51_p3  ;;  %p83_p10 = scmp.eq.s32.totalorder %s294_s13, 1 }
   0xe   : > { %p551_p9 = por %p77_p6, %p45_p1  ;;  %p322_p13 = scmp.lt.s32.totalorder %s486_s11, 2 }
   0xf   : > { %s556_s20 = scalar_select %p36_p7, %s474_s8, %s38_s15  }
  0x10   : > { %p558_p11 = por %p83_p10, %p51_p3  ;;  %s103_s22 = sand.u32 1, %s474_s8  }
  0x11   : > { %s297_s23 = sshll.u32 %s103_s22, 3  ;;  %s308_s24 = sshll.u32 %s482_s10, 7 }
  0x12   : > { %s643_s21 = scalar_select %p558_p11, 1, 0 }
  0x13   : > { %s115_s27 = scalar_lea.hbm %s638_s0, %s308_s24  ;;  %s107_s28 = scalar_lea.vmem [#allocation2], %s297_s23 }
  0x14   : > { %s117_s29 = sshll.u32 %s107_s28, 4  ;;  %p571_p0 = pnand %p322_p13, %p541_p4  ;;  %s118_s29 = int_to_ptr.vmem [resolvable:$true] %s117_s29 }
  0x15   : > { %p300_p1 = scmp.ge.s32.totalorder %s486_s11, 1  ;;  %p122_p2 = scmp.lt.s32.totalorder %s486_s11, 3 }
  0x16   : > { %s104_s2 = scalar_lea.sflag [#allocation3], %s103_s22  ;;  %p380_p3 = pneg %p571_p0 }
  0x17   : > { %s391_s3 = scalar_lea.vmem %s118_s29, 128  ;;  %s488_s4 = smov [#allocation2]  }
  0x18   : > { %p392_p5 = scmp.ne.s32.totalorder %s118_s29, %s391_s3  ;;  %s396_s5 = sshll.u32 %s488_s4, 4  ;;  %s397_s5 = int_to_ptr.vmem [resolvable:$false] %s396_s5 }
  0x19   : > { %s398_s12 = scalar_lea.vmem %s397_s5, 256  ;;  %p399_p10 = scmp.lt.s32.totalorder %s118_s29, %s397_s5 }
  0x1a   : > { %p394_p6 = pnand %p392_p5, %p380_p3  ;;  %p400_p12 = scmp.lt.s32.totalorder %s398_s12, %s391_s3 }
  0x1c   : > { %p395_p7 = pneg %p394_p6  ;;  %p401_p4 = por %p400_p12, %p399_p10 }
  0x1e   : > { %p402_p13 = pnand %p401_p4, %p395_p7 }
  0x20   : > { %405 = shalt.err (!%p402_p13)
}
  0x21   : > { %317 = dma.hbm_to_vmem [thread:$0]  (!%p571_p0), %s115_s27, 128, %s118_s29, %s104_s2  }
  0x22   : > { %p123_p11 = pnand %p300_p1, %p122_p2 }
  0x23   : > { %s586_s13 = sand.u32 (!%p123_p11), 1, %s470_s7  }
  0x24   : > { %126 = sbr.rel (%p123_p11) target bundleno = 115 (0x73), region = 24  ;;  %s301_s15 = sshll.u32 (!%p123_p11), %s586_s13, 3 }
  0x25   : > { %s129_s16 = scalar_lea.sflag (!%p123_p11), [#allocation3], %s586_s13  ;;  %s132_s17 = scalar_lea.vmem (!%p123_p11), [#allocation2], %s301_s15 }
  0x29   : > { %457 = dma.done.wait (%p547_p8), %s129_s16, 128  }
  0x2a   : > { %459 = vsyncadd (%p547_p8), %s129_s16, 4294967168  ;;  %v153_v0 = vld [vmem:[%s132_s17] sm:$0xff]  ;;  %vm167_vm2 = vcmask 1043456   ;;  %s150_s18 = scalar_lea.vmem [#allocation5], %s301_s15  ;;  %s309_s23 = sshll.u32 %s478_s9, 7 }
  0x2b   : > { %v154_v1 = vmax.f32 %v153_v0, 0.0  ;;  %s209_s22 = sshll.u32 %s150_s18, 4  ;;  %s207_s26 = scalar_lea.hbm %s639_s1, %s309_s23  ;;  %s210_s22 = int_to_ptr.vmem [resolvable:$true] %s209_s22 }
  0x2c   : > { %s193_s27 = scalar_lea.sflag [#allocation4], %s586_s13  ;;  %s406_s28 = scalar_lea.vmem %s210_s22, 128 }
  0x2d   : > { %v155_v2 = vadd.f32 1e-06, %v154_v1  ;;  %p407_p8 = scmp.ne.s32.totalorder %s210_s22, %s406_s28  ;;  %s489_s29 = smov [#allocation5]  }
  0x2e   : > { %s410_s30 = sshll.u32 %s489_s29, 4  ;;  %s411_s30 = int_to_ptr.vmem [resolvable:$false] %s410_s30 }
  0x2f   : > { %v156_v3 = vmin.f32 %v155_v2, 1000000.0  ;;  %p408_p11 = pnand %p407_p8, %p551_p9  ;;  %s412_s2 = scalar_lea.vmem %s411_s30, 256 }
  0x30   : > { %p413_p0 = scmp.lt.s32.totalorder %s210_s22, %s411_s30  ;;  %p414_p1 = scmp.lt.s32.totalorder %s412_s2, %s406_s28 }
  0x31   : > { %372 = vrsqrt.f32 %v156_v3  ;;  %vm159_vm0 = vcmp.eq.f32.partialorder %v156_v3, inf  ;;  %v162_v5 = vand.u32 2147483648, %v156_v3  ;;  %vm161_vm1 = vcmp.eq.f32.partialorder %v156_v3, 0.0  ;;  %p409_p12 = pneg %p408_p11 }
  0x32   : > { %p415_p2 = por %p414_p1, %p413_p0 }
  0x34   : > { %p416_p3 = pnand %p415_p2, %p409_p12 }
  0x3e   : > { %v373_v4 = vpop.eup %372 }
  0x3f   : > { %v158_v6 = vmul.f32 %v373_v4, %v156_v3 }
  0x41   : > { %v160_v7 = vsel %vm159_vm0, %v156_v3, %v158_v6 }
  0x42   : > { %v163_v8 = vsel %vm161_vm1, %v162_v5, %v160_v7 }
  0x43   : > { %v165_v9 = vcombine.high %v163_v8, %v163_v8  ;;  %v168_v10 = vsel %vm167_vm2, %v163_v8, 0.0 }
  0x44   : > { %v169_v11 = vrot.slane %v168_v10, 4 }
  0x45   : > { %v175_v12 = vsel %vm167_vm2, %v165_v9, 0.0 }
  0x46   : > { %v170_v13 = vadd.f32 %v169_v11, %v168_v10  ;;  %v176_v14 = vrot.slane %v175_v12, 4 }
  0x48   : > { %v171_v15 = vrot.slane %v170_v13, 2  ;;  %v177_v16 = vadd.f32 %v176_v14, %v175_v12 }
  0x4a   : > { %v172_v17 = vadd.f32 %v171_v15, %v170_v13  ;;  %v178_v18 = vrot.slane %v177_v16, 2 }
  0x4c   : > { %v173_v19 = vrot.slane %v172_v17, 1  ;;  %v179_v20 = vadd.f32 %v178_v18, %v177_v16 }
  0x4e   : > { %v174_v21 = vadd.f32 %v173_v19, %v172_v17  ;;  %v180_v22 = vrot.slane %v179_v20, 1 }
  0x50   : > { %v181_v23 = vadd.f32 %v180_v22, %v179_v20  ;;  %v182_v24 = vadd.f32 1e-06, %v174_v21 }
  0x52   : > { %v183_v25 = vadd.f32 1e-06, %v181_v23  ;;  %374 = vrcp.f32 %v182_v24 }
  0x54   : > { %376 = vrcp.f32 %v183_v25 }
  0x5f   : > { %v375_v26 = vpop.eup %374 }
  0x61   : > { %v377_v27 = vpop.eup %376 }
  0x62   : > { %v188_v28 = vcombine.low %v375_v26, %v377_v27 }
  0x64   : > { %v190_v29 = vmul.f32 %v188_v28, %v163_v8 }
  0x66   : > { %191 = vst [vmem:[%s150_s18] sm:$0xff] %v190_v29 }
  0x67   : > { %419 = shalt.err (!%p416_p3)
}
  0x68   : > { %s420_s9 = scalar_lea.hbm %s207_s26, 128  ;;  %s424_s5 = scalar_lea.hbm %s639_s1, 256 }
  0x69   : > { %p421_p5 = scmp.ne.s32.totalorder %s207_s26, %s420_s9  ;;  %p425_p10 = scmp.lt.s32.totalorder %s207_s26, %s639_s1 }
  0x6a   : > { %p426_p4 = scmp.lt.s32.totalorder %s424_s5, %s420_s9 }
  0x6b   : > { %p422_p6 = pnand %p421_p5, %p551_p9 }
  0x6c   : > { %p427_p13 = por %p426_p4, %p425_p10 }
  0x6d   : > { %p423_p7 = pneg %p422_p6 }
  0x6f   : > { %p428_p8 = pnand %p427_p13, %p423_p7 }
  0x71   : > { %431 = shalt.err (!%p428_p8)
}
  0x72   : > { %312 = dma.vmem_to_hbm [thread:$0]  (%p551_p9), %s210_s22, 128, %s207_s26, %s193_s27  }
  0x73 PF: > { %s221_s15 = sand.u32 1, %s466_s6   ;;  %p645_p11 = scmp.ne.s32.totalorder %s643_s21, 0 }
  0x74   : > { %p646_p12 = scmp.ge.s32.totalorder %s486_s11, 2  ;;  %s222_s16 = scalar_lea.sflag [#allocation4], %s221_s15 }
  0x76   : > { %p319_p0 = pnand %p646_p12, %p645_p11 }
  0x78   : > { %p320_p1 = pneg %p319_p0 }
  0x7a   : > { %461 = dma.done.wait (%p320_p1), %s222_s16, 128  }
  0x7b   : > { %463 = vsyncadd (%p320_p1), %s222_s16, 4294967168  ;;  %s17_s11 = sadd.s32 1, %s486_s11   ;;  %s647_s6 = smov %s470_s7 }
  0x7c   : > { %p14_p2 = scmp.ge.s32.totalorder %s17_s11, 4   ;;  %s648_s7 = smov %s474_s8 }
  0x7d   : > { %s649_s8 = smov %s556_s20  ;;  %s650_s9 = smov %s482_s10 }
  0x7e   : > { %s651_s10 = smov %s653_s14  ;;  %16 = sbr.rel (!%p14_p2) target bundleno = 6 (0x6), region = 69 }
  0x83   :  { %227 = vsyncpa [#allocation3], 1 }
  0x84   :  { %229 = vsyncpa [#allocation3 + $0x1], 1 }
  0x85   :  { %230 = vsyncpa [#allocation4], 1 }
  0x86   :  { %232 = vsyncpa [#allocation4 + $0x1], 1 }

</bundles_post_ra>
